<compile_context>
chip_gen: v7x
topology: tpu7x:2x2x1
jax: 0.10.0
libtpu: 0.0.40
codegen_flags: <defaults>
</compile_context>

<pallas_src>
import functools

import jax
import jax.numpy as jnp
from jax.experimental import pallas as pl
from jax.experimental.pallas import tpu as pltpu


def _round_up(v, m):
    return -(-v // m) * m


def bitcodes_kernel(x_ref, cbdT_ref, cbd_ref, cbesum_ref, out_ref, bits_ref):
    # x_ref      : (tm, Dk)   lane-packed input rows (f32)
    # cbdT_ref   : (Dk, Pk)   block-diag (cb_odd - cb_even)^T
    # cbd_ref    : (Pk, Dk)   block-diag (cb_odd - cb_even)
    # cbesum_ref : (1,  Dk)   tiled sum of even codebook rows
    # out_ref    : (tm, Dk)
    # bits_ref   : (tm, Pk)   int8 {0, 1}
    x = x_ref[...]

    # sim_odd - sim_even, canonical (M,K)x(K,N) MXU matmul (no transposes).
    sim_d = jnp.dot(x, cbdT_ref[...], preferred_element_type=jnp.float32)

    # argmax over the pair dim of size 2; strict '>' reproduces torch.argmax
    # tie -> index 0 semantics (up to fp reassociation of the folded matmul).
    bits = sim_d > 0.0
    bits_f = bits.astype(jnp.float32)

    # out = sum_even + bits @ (cb_odd - cb_even); canonical matmul again.
    out = cbesum_ref[...] + jnp.dot(bits_f, cbd_ref[...],
                                    preferred_element_type=jnp.float32)

    out_ref[...] = out.astype(out_ref.dtype)
    bits_ref[...] = bits.astype(bits_ref.dtype)


def _vmem_capacity_bytes():
    try:
        return int(pltpu.get_tpu_info().vmem_capacity_bytes)
    except Exception:
        return 64 << 20  # conservative (v7x-sized) fallback


def _pick_tile_m(bmk, dk, pk):
    """Packed-row tile: as big as the per-generation VMEM budget allows."""
    vmem_cap = _vmem_capacity_bytes()
    dl = _round_up(dk, 128)                    # lane-padded f32 row width
    pk_pad = _round_up(max(pk, 1), 128)        # lane-padded int8 bits row
    # double-buffered per-row VMEM bytes: x tile + out tile + bits tile
    per_row = 2 * (4 * dl + 4 * dl + pk_pad)
    budget = min(vmem_cap // 2, 48 << 20)      # ~32 MiB on v7x, 48 MiB on v5e/v6e
    tm = max(256, min(8192, budget // per_row))
    tm = (tm // 256) * 256
    # Prefer >= 8 grid programs on big problems (2 TCs on v7x + pipelining),
    # without shrinking tiles below ~0.5-1 MiB.
    if _round_up(bmk, 256) >= 8 * 256:
        tm = min(tm, max(1024, _round_up(pl.cdiv(bmk, 8), 256)))
    if tm >= _round_up(bmk, 8):
        tm = _round_up(bmk, 8)                 # single program covers it all
    return tm, vmem_cap


@functools.partial(jax.jit, static_argnames=("tile_m",))
def bitcodes_forward(x, codebook, tile_m=None):
    """x: (B, M, D) float, codebook: (2*num_bits, D) float.

    Returns (out, bits): out (B, M, D) in x.dtype, bits (B, M, num_bits) int8
    (values 0/1; widen lazily at the consumer if int64 semantics are needed).
    """
    B, M, D = x.shape
    N, Dc = codebook.shape
    assert Dc == D and N % 2 == 0
    P = N // 2

    # Lane packing: pack k consecutive rows into one 128-lane row when D < 128.
    k = (128 // D) if (D < 128 and 128 % D == 0) else 1
    Dk, Pk = k * D, k * P

    # Fold the codebook once per call (plain XLA, tiny).
    cb_even = codebook[0::2].astype(jnp.float32)               # (P, D)
    cb_odd = codebook[1::2].astype(jnp.float32)                # (P, D)
    cb_diff = cb_odd - cb_even                                  # (P, D)
    cbe_sum = jnp.sum(cb_even, axis=0, keepdims=True)           # (1, D)

    eye_k = jnp.eye(k, dtype=jnp.float32)
    cbdT_bd = jnp.kron(eye_k, cb_diff.T)                        # (Dk, Pk)
    cbd_bd = jnp.kron(eye_k, cb_diff)                           # (Pk, Dk)
    cbesum_bd = jnp.tile(cbe_sum, (1, k))                       # (1, Dk)

    BM = B * M
    BMk = pl.cdiv(BM, k)                                        # packed rows needed
    if tile_m is None:
        tm, vmem_cap = _pick_tile_m(BMk, Dk, Pk)
    else:
        assert tile_m % 8 == 0
        tm, vmem_cap = tile_m, _vmem_capacity_bytes()
    BMk_pad = _round_up(BMk, tm)
    BM_pad = BMk_pad * k
    grid = (BMk_pad // tm,)

    x_flat = x.reshape(BM, D).astype(jnp.float32)
    if BM_pad != BM:
        # Padded rows are zeros -> bits 0, out = cbe_sum; sliced off below.
        x_flat = jnp.pad(x_flat, ((0, BM_pad - BM), (0, 0)))
    x_packed = x_flat.reshape(BMk_pad, Dk)

    # Raise the scoped-VMEM limit so the large double-buffered tiles fit
    # (v5e default is 16 MiB); keep headroom under the physical capacity.
    vmem_limit = int(max(32 << 20, min(vmem_cap * 3 // 4, 100 << 20)))

    out_packed, bits_packed = pl.pallas_call(
        bitcodes_kernel,
        out_shape=(
            jax.ShapeDtypeStruct((BMk_pad, Dk), x.dtype),
            jax.ShapeDtypeStruct((BMk_pad, Pk), jnp.int8),
        ),
        grid_spec=pltpu.PrefetchScalarGridSpec(
            num_scalar_prefetch=0,
            grid=grid,
            in_specs=[
                pl.BlockSpec((tm, Dk), lambda i: (i, 0)),
                pl.BlockSpec((Dk, Pk), lambda i: (0, 0)),
                pl.BlockSpec((Pk, Dk), lambda i: (0, 0)),
                pl.BlockSpec((1, Dk), lambda i: (0, 0)),
            ],
            out_specs=[
                pl.BlockSpec((tm, Dk), lambda i: (i, 0)),
                pl.BlockSpec((tm, Pk), lambda i: (i, 0)),
            ],
        ),
        compiler_params=pltpu.CompilerParams(
            dimension_semantics=("parallel",),
            vmem_limit_bytes=vmem_limit),
    )(x_packed, cbdT_bd, cbd_bd, cbesum_bd)

    # Unpack lanes (free row-major reshapes) and drop the padding rows.
    out = out_packed.reshape(BM_pad, D)[:BM].reshape(B, M, D)
    bits = bits_packed.reshape(BM_pad, P)[:BM].reshape(B, M, P)
    return out, bits


def _reference(x, codebook):
    # Pure-JAX reference mirroring the PyTorch eval-mode forward.
    sim = jnp.einsum("bmd,nd->bmn", x, codebook)
    B, M, N = sim.shape
    pairs = sim.reshape(B, M, N // 2, 2)
    bits = jnp.argmax(pairs, axis=-1)
    attn = jax.nn.one_hot(bits, 2, dtype=jnp.float32).reshape(B, M, N)
    out = jnp.einsum("bmn,nd->bmd", attn, codebook)
    return out, bits.astype(jnp.int32)


if __name__ == "__main__":
    # Small deterministic example consistent with the module:
    #   batch=2, seq(m)=8, features=32, num_bits=8 -> codebook (16, 32)
    features = 32
    num_bits = 8
    temperature = 1  # unused on the eval path

    key = jax.random.PRNGKey(0)
    kx, kc = jax.random.split(key)
    x = jax.random.normal(kx, (2, 8, features), dtype=jnp.float32)
    codebook = jax.random.normal(kc, (2 * num_bits, features), dtype=jnp.float32)

    out, bits = bitcodes_forward(x, codebook)
    jax.block_until_ready((out, bits))

    out_ref, bits_ref = _reference(x, codebook)
    assert out.shape == (2, 8, features) and bits.shape == (2, 8, num_bits)
    assert bits.dtype == jnp.int8
    assert int(jnp.sum(bits.astype(jnp.int32) != bits_ref)) == 0
    assert jnp.allclose(out, out_ref, atol=1e-4, rtol=1e-4)

    print("KERNEL_OK")
</pallas_src>

<mosaic_0001>
module attributes {stable_mosaic.version = 11 : i64} {
  func.func @bitcodes_kernel(%arg0: i32, %arg1: memref<8x128xf32, #tpu.memory_space<vmem>>, %arg2: memref<128x32xf32, #tpu.memory_space<vmem>>, %arg3: memref<32x128xf32, #tpu.memory_space<vmem>>, %arg4: memref<1x128xf32, #tpu.memory_space<vmem>>, %arg5: memref<8x128xf32, #tpu.memory_space<vmem>>, %arg6: memref<8x32xi8, #tpu.memory_space<vmem>>) attributes {dimension_semantics = [#tpu.dimension_semantics<parallel>], iteration_bounds = array<i64: 1>, scalar_prefetch = 0 : i64, scratch_operands = 0 : i64, tpu.core_type = #tpu.core_type<tc>, window_params = [{transform_indices = @transform_0, window_bounds = array<i64: 8, 128>}, {pipeline_mode = #tpu.pipeline_mode<synchronous>, transform_indices = @transform_1, window_bounds = array<i64: 128, 32>}, {pipeline_mode = #tpu.pipeline_mode<synchronous>, transform_indices = @transform_2, window_bounds = array<i64: 32, 128>}, {pipeline_mode = #tpu.pipeline_mode<synchronous>, transform_indices = @transform_3, window_bounds = array<i64: 1, 128>}, {transform_indices = @transform_4, window_bounds = array<i64: 8, 128>}, {transform_indices = @transform_5, window_bounds = array<i64: 8, 32>}]} {
    %c0 = arith.constant 0 : index
    %c0_0 = arith.constant 0 : index
    %0 = vector.load %arg1[%c0, %c0_0] : memref<8x128xf32, #tpu.memory_space<vmem>>, vector<8x128xf32>
    %c0_1 = arith.constant 0 : index
    %c0_2 = arith.constant 0 : index
    %1 = vector.load %arg2[%c0_1, %c0_2] : memref<128x32xf32, #tpu.memory_space<vmem>>, vector<128x32xf32>
    %cst = arith.constant dense<0.000000e+00> : vector<8x32xf32>
    %2 = tpu.matmul %0, %1, %cst {dimension_numbers = #tpu.dot_dimension_numbers<[1], [0], [0], [1], [0, 0, 1, 1], [], []>} : vector<8x128xf32>, vector<128x32xf32>, vector<8x32xf32> -> vector<8x32xf32>
    %cst_3 = arith.constant 0.000000e+00 : f32
    %3 = vector.broadcast %cst_3 : f32 to vector<8x32xf32>
    %4 = arith.cmpf ogt, %2, %3 : vector<8x32xf32>
    %5 = arith.extui %4 : vector<8x32xi1> to vector<8x32xi32>
    %6 = arith.sitofp %5 : vector<8x32xi32> to vector<8x32xf32>
    %c0_4 = arith.constant 0 : index
    %c0_5 = arith.constant 0 : index
    %7 = vector.load %arg4[%c0_4, %c0_5] : memref<1x128xf32, #tpu.memory_space<vmem>>, vector<1x128xf32>
    %c0_6 = arith.constant 0 : index
    %c0_7 = arith.constant 0 : index
    %8 = vector.load %arg3[%c0_6, %c0_7] : memref<32x128xf32, #tpu.memory_space<vmem>>, vector<32x128xf32>
    %cst_8 = arith.constant dense<0.000000e+00> : vector<8x128xf32>
    %9 = tpu.matmul %6, %8, %cst_8 {dimension_numbers = #tpu.dot_dimension_numbers<[1], [0], [0], [1], [0, 0, 1, 1], [], []>} : vector<8x32xf32>, vector<32x128xf32>, vector<8x128xf32> -> vector<8x128xf32>
    %10 = vector.broadcast %7 : vector<1x128xf32> to vector<8x128xf32>
    %11 = arith.addf %10, %9 : vector<8x128xf32>
    %c0_9 = arith.constant 0 : index
    %c0_10 = arith.constant 0 : index
    %12 = vector.load %arg5[%c0_9, %c0_10] : memref<8x128xf32, #tpu.memory_space<vmem>>, vector<8x128xf32>
    tpu.vector_store %arg5[%c0_9, %c0_10], %11 {strides = array<i32>} : memref<8x128xf32, #tpu.memory_space<vmem>>, vector<8x128xf32>,
    %13 = arith.extui %4 : vector<8x32xi1> to vector<8x32xi8>
    %c0_11 = arith.constant 0 : index
    %c0_12 = arith.constant 0 : index
    %14 = vector.load %arg6[%c0_11, %c0_12] : memref<8x32xi8, #tpu.memory_space<vmem>>, vector<8x32xi8>
    tpu.vector_store %arg6[%c0_11, %c0_12], %13 {strides = array<i32>} : memref<8x32xi8, #tpu.memory_space<vmem>>, vector<8x32xi8>,
    return
  }
  func.func @transform_0(%arg0: i32) -> (i32, i32) {
    %c0_i32 = arith.constant 0 : i32
    %c0_i32_0 = arith.constant 0 : i32
    return %arg0, %c0_i32 : i32, i32
  }
  func.func @transform_1(%arg0: i32) -> (i32, i32) {
    %c0_i32 = arith.constant 0 : i32
    %c0_i32_0 = arith.constant 0 : i32
    %c0_i32_1 = arith.constant 0 : i32
    return %c0_i32, %c0_i32_0 : i32, i32
  }
  func.func @transform_2(%arg0: i32) -> (i32, i32) {
    %c0_i32 = arith.constant 0 : i32
    %c0_i32_0 = arith.constant 0 : i32
    %c0_i32_1 = arith.constant 0 : i32
    return %c0_i32, %c0_i32_0 : i32, i32
  }
  func.func @transform_3(%arg0: i32) -> (i32, i32) {
    %c0_i32 = arith.constant 0 : i32
    %c0_i32_0 = arith.constant 0 : i32
    %c0_i32_1 = arith.constant 0 : i32
    return %c0_i32, %c0_i32_0 : i32, i32
  }
  func.func @transform_4(%arg0: i32) -> (i32, i32) {
    %c0_i32 = arith.constant 0 : i32
    %c0_i32_0 = arith.constant 0 : i32
    return %arg0, %c0_i32 : i32, i32
  }
  func.func @transform_5(%arg0: i32) -> (i32, i32) {
    %c0_i32 = arith.constant 0 : i32
    %c0_i32_0 = arith.constant 0 : i32
    return %arg0, %c0_i32 : i32, i32
  }
}

</mosaic_0001>

<bundles_post_ra>
// kernel: bitcodes_forward.1
= control target key start
LH: loop header
LB: loop body
LE: loop exit
PB: predicated region body
PF: predicated region fallthrough
CT: control target
= control target key end

     0   :  { %v316_v0 = vmov 0.0|0.0   ;;  %vm317_vm0 = vmmov 0   ;;  %v318_v4 = vmov 0.0   ;;  %vm116_vm1 = vcmask 261120   ;;  %s422_s1 = inlined_call_operand.vmem [shape: f32[128,32], index: 1, kind: input, shape index: {}]   ;;  %s423_s2 = inlined_call_operand.vmem [shape: f32[32,128], index: 2, kind: input, shape index: {}]   ;;  %s424_s0 = inlined_call_operand.vmem [shape: f32[8,128], index: 0, kind: input, shape index: {}]   ;;  %s425_s5 = inlined_call_operand.vmem [shape: s8[8,32], index: 5, kind: output, shape index: {1}]   ;;  %s426_s3 = inlined_call_operand.vmem [shape: f32[1,128], index: 3, kind: input, shape index: {}]   ;;  %s427_s4 = inlined_call_operand.vmem [shape: f32[8,128], index: 4, kind: output, shape index: {0}]  }
   0x1   :  { %282 = vmatprep.subr.bf16.mxu0 %v316_v0  ;;  %v22_v1 = vld [vmem:[%s422_s1] sm:$0xff]  ;;  %v23_v2 = vld [vmem:[%s422_s1 + $0x8] sm:$0xff]  ;;  %v24_v3 = vld [vmem:[%s422_s1 + $0x10] sm:$0xff]  ;;  %268 = vmatprep.mubr.msk.f32.mxu0 %vm317_vm0, %v318_v4  ;;  %vm201_vm4 = vcmask 254976   ;;  %v319_v36 = vmov 0  }
   0x2   :  { %v283_v5 = vpack.c.bf16 %v23_v2, %v22_v1  ;;  %v25_v6 = vld [vmem:[%s422_s1 + $0x18] sm:$0xff]  ;;  %306 = vmatprep.subr.bf16.mxu1 %v316_v0  ;;  %279 = vmatprep.mubr.msk.f32.mxu1 %vm317_vm0, %v318_v4  ;;  %v26_v8 = vld [vmem:[%s422_s1 + $0x20] sm:$0xff]  ;;  %v27_v9 = vld [vmem:[%s422_s1 + $0x28] sm:$0xff] }
   0x3   :  { %v286_v7 = vpack.c.bf16 %v25_v6, %v24_v3  ;;  %v112_v10 = vld [vmem:[%s423_s2] sm:$0xff]  ;;  %v113_v11 = vld [vmem:[%s423_s2 + $0x8] sm:$0xff]  ;;  %v289_v12 = vpack.c.bf16 %v27_v9, %v26_v8  ;;  %v28_v14 = vld [vmem:[%s422_s1 + $0x30] sm:$0xff] }
   0x4   :  { %284 = vmatpush3.bf16.msra.mxu0 %v283_v5  ;;  %v307_v13 = vpack.c.bf16 %v113_v11, %v112_v10  ;;  %v29_v15 = vld [vmem:[%s422_s1 + $0x38] sm:$0xff]  ;;  %v30_v17 = vld [vmem:[%s422_s1 + $0x40] sm:$0xff]  ;;  %v31_v18 = vld [vmem:[%s422_s1 + $0x48] sm:$0xff] }
   0x5   :  { %285 = vmatprep.subr.bf16.mxu0 %v316_v0  ;;  %v292_v16 = vpack.c.bf16 %v29_v15, %v28_v14  ;;  %v295_v19 = vpack.c.bf16 %v31_v18, %v30_v17  ;;  %v32_v20 = vld [vmem:[%s422_s1 + $0x50] sm:$0xff]  ;;  %v33_v21 = vld [vmem:[%s422_s1 + $0x58] sm:$0xff]  ;;  %v34_v23 = vld [vmem:[%s422_s1 + $0x60] sm:$0xff] }
   0x6   :  { %308 = vmatpush3.bf16.msra.mxu1 %v307_v13  ;;  %v298_v22 = vpack.c.bf16 %v33_v21, %v32_v20  ;;  %v35_v24 = vld [vmem:[%s422_s1 + $0x68] sm:$0xff]  ;;  %v36_v26 = vld [vmem:[%s422_s1 + $0x70] sm:$0xff]  ;;  %v37_v27 = vld [vmem:[%s422_s1 + $0x78] sm:$0xff] }
   0x7   :  { %309 = vmatprep.subr.bf16.mxu1 %v316_v0  ;;  %v301_v25 = vpack.c.bf16 %v35_v24, %v34_v23  ;;  %v304_v28 = vpack.c.bf16 %v37_v27, %v36_v26  ;;  %v21_v29 = vld [vmem:[%s424_s0] sm:$0xff]  ;;  %v114_v30 = vld [vmem:[%s423_s2 + $0x10] sm:$0xff]  ;;  %v115_v31 = vld [vmem:[%s423_s2 + $0x18] sm:$0xff] }
   0x8   :  { %287 = vmatpush3.bf16.msra.mxu0 %v286_v7  ;;  %v310_v32 = vpack.c.bf16 %v115_v31, %v114_v30  ;;  %v213_v38 = vld [vmem:[%s426_s3] ss:$0 sm:$0xff] }
   0x9   :  { %288 = vmatprep.subr.bf16.mxu0 %v316_v0 }
   0xa   :  { %311 = vmatpush3.bf16.msra.mxu1 %v310_v32 }
   0xc   :  { %290 = vmatpush3.bf16.msra.mxu0 %v289_v12 }
   0xd   :  { %291 = vmatprep.subr.bf16.mxu0 %v316_v0 }
  0x10   :  { %293 = vmatpush3.bf16.msra.mxu0 %v292_v16 }
  0x11   :  { %294 = vmatprep.subr.bf16.mxu0 %v316_v0 }
  0x14   :  { %296 = vmatpush3.bf16.msra.mxu0 %v295_v19 }
  0x15   :  { %297 = vmatprep.subr.bf16.mxu0 %v316_v0 }
  0x18   :  { %299 = vmatpush3.bf16.msra.mxu0 %v298_v22 }
  0x19   :  { %300 = vmatprep.subr.bf16.mxu0 %v316_v0 }
  0x1c   :  { %302 = vmatpush3.bf16.msra.mxu0 %v301_v25 }
  0x1d   :  { %303 = vmatprep.subr.bf16.mxu0 %v316_v0 }
  0x20   :  { %305 = vmatpush3.bf16.msra.mxu0 %v304_v28 }
  0x23   :  { %269 = vmatmul.mubr.f32.vlgmr.msra.gmra.mrb[0].mxu0 %v21_v29 }
  0xf6   :  { %v104_v33 = vpop.f32.mrb[0].mxu0 }
  0xf7   :  { %vm108_vm2 = vcmp.gt.f32.partialorder %v104_v33, 0.0  ;;  %v270_v34 = vpop.f32.mrb[1].mxu0 }
  0xf8   :  { %v211_v35 = vsel %vm108_vm2, 1.0, %v318_v4  ;;  %vm198_vm3 = vmpackc.low %vm108_vm2, %vm108_vm2 }
  0xf9   :  { %vm199_vm5 = vmpackc.even %vm198_vm3, %vm198_vm3  ;;  %280 = vmatmul.mubr.msk.f32.vlgmr.msra.gmra.mrb[0].mxu1 %vm116_vm1, %v211_v35 }
  0xfa   :  { %v200_v37 = vsel %vm199_vm5, 16843009, %v319_v36 }
  0xfb   :  { %202 = vst.msk [vmem:[%s425_s5] sm:$0x3] %vm201_vm4, %v200_v37 }
 0x1cc   :  { %v186_v39 = vpop.f32.mrb[0].mxu1 }
 0x1cd   :  { %v196_v40 = vadd.f32 %v213_v38, %v186_v39  ;;  %v281_v41 = vpop.f32.mrb[1].mxu1 }
 0x1cf   :  { %197 = vst [vmem:[%s427_s4] sm:$0xff] %v196_v40 }

</bundles_post_ra>
